<compile_context>
chip_gen: v5e
topology: v5e:2x2
jax: 0.10.0
libtpu: 0.0.40
codegen_flags: <defaults>
</compile_context>

<pallas_src>
import functools

import jax
import jax.numpy as jnp
from jax import lax
from jax.experimental import pallas as pl
from jax.experimental.pallas import tpu as pltpu


def _round_up(v, m):
    return (v + m - 1) // m * m


def residual_conv_kernel(x_ref, bn1_ref, w1_ref, w23_ref, bias_ref, o_ref,
                         h_scr, *, stride):
    b_tile, l_pad, cin_p = x_ref.shape          # l_pad = l_in + 2 (halo already in x)
    l_in = l_pad - 2
    l_out = o_ref.shape[1]
    cout_p = o_ref.shape[2]
    m = b_tile * l_out
    mxu_dtype = w1_ref.dtype

    x = x_ref[...]                               # (b, l_in+2, cin_p) f32, halo rows are 0

    # ---- BN1 + ReLU (f32 VPU).  conv1 zero-pads AFTER BN/ReLU, so the halo rows of
    # h must stay zero (BN1 bias would otherwise leak into them).
    bn1 = bn1_ref[...]                           # (2, cin_p) = [scale; bias]
    h = jnp.maximum(x * bn1[0:1, :] + bn1[1:2, :], 0.0)
    row = lax.broadcasted_iota(jnp.int32, (l_pad, cin_p), 0)
    interior = jnp.logical_and(row >= 1, row <= l_in)[None, :, :]
    h = jnp.where(interior, h, 0.0)
    h_scr[...] = h                               # single whole-block store

    def taps(ref, t):
        # rows t, t+stride, ..., t+(l_out-1)*stride for every sequence in the block
        if stride == 1:
            return ref[:, pl.ds(t, l_out), :]
        return ref[:, pl.ds(t, l_out, stride=stride), :]

    biases = bias_ref[...]                       # (2, cout_p)

    # ---- conv1 (stride, BN2 folded) + ReLU: one im2col matmul, M = b_tile*l_out.
    slab1 = jnp.concatenate([taps(h_scr, t) for t in range(3)], axis=-1)
    slab1 = slab1.reshape(m, 3 * cin_p).astype(mxu_dtype)
    y1 = jnp.dot(slab1, w1_ref[...], preferred_element_type=jnp.float32)
    h2 = jnp.maximum(y1 + biases[0:1, :], 0.0)   # (m, cout_p) f32

    # ---- conv2 (stride 1) + skip conv (stride, BN3 folded): one fused matmul.
    zrow = jnp.zeros((b_tile, 1, cout_p), jnp.float32)
    h2_pad = jnp.concatenate([zrow, h2.reshape(b_tile, l_out, cout_p), zrow], axis=1)
    slab2 = jnp.concatenate([h2_pad[:, t:t + l_out, :] for t in range(3)], axis=-1)
    slab3 = jnp.concatenate([taps(x_ref, t) for t in range(3)], axis=-1)
    slab23 = jnp.concatenate([slab2, slab3], axis=-1)
    slab23 = slab23.reshape(m, 3 * (cout_p + cin_p)).astype(mxu_dtype)
    y = jnp.dot(slab23, w23_ref[...], preferred_element_type=jnp.float32)
    y = y + biases[1:2, :]

    o_ref[...] = y.reshape(b_tile, l_out, cout_p).astype(o_ref.dtype)


def _fold_bn(p, eps=1e-5):
    gamma, beta, mean, var = p
    scale = gamma / jnp.sqrt(var + eps)
    bias = beta - mean * scale
    return scale, bias


def _pack_weight(w_torch, cin_p, cout_p, out_scale=None):
    """torch (Cout, Cin, 3) -> (3*cin_p, cout_p), tap-major, zero-padded channels.

    If out_scale is given, the per-output-channel scale of a following BN is folded
    into the weight.
    """
    c_out, c_in, _ = w_torch.shape
    w = jnp.transpose(w_torch, (2, 1, 0))        # (3, Cin, Cout)
    if out_scale is not None:
        w = w * out_scale[None, None, :]
    w = jnp.pad(w, ((0, 0), (0, cin_p - c_in), (0, cout_p - c_out)))
    return w.reshape(3 * cin_p, cout_p)


def _pick_b_tile(n, l_in, l_out, cin_p, cout_p, batch_tile, mxu_bytes):
    """Largest batch tile fitting a conservative VMEM budget (safe for v7x's 64 MiB
    physical VMEM) while keeping the grid >= 2 steps for megacore sharding."""
    def vmem_bytes(bt):
        in_blk = bt * (l_in + 2) * cin_p * 4
        out_blk = bt * l_out * cout_p * 4
        weights = (3 * cin_p * cout_p + 3 * (cin_p + cout_p) * cout_p) * mxu_bytes
        scratch = bt * (l_in + 2) * cin_p * 4
        slabs = bt * l_out * (3 * cin_p + 3 * (cin_p + cout_p)) * 4   # f32 upper bound
        return 2 * (in_blk + out_blk) + weights + scratch + slabs

    budget = 40 * 1024 * 1024
    bt = max(1, min(batch_tile, pl.cdiv(n, 2)))
    while bt > 1 and vmem_bytes(bt) > budget:
        bt -= 1
    return bt


def residual_conv(x_ncl, params, stride, *, batch_tile=8, mxu_dtype=jnp.bfloat16):
    """x_ncl: (N, C_in, L) float32, PyTorch NCL layout. Returns (N, C_out, L_out)."""
    n, c_in, l_in = x_ncl.shape
    c_out = params['w1'].shape[0]
    l_out = (l_in - 1) // stride + 1             # k=3, padding=1

    cin_p = _round_up(c_in, 128)                 # lane-dense channel widths
    cout_p = _round_up(c_out, 128)

    mxu_bytes = jnp.dtype(mxu_dtype).itemsize
    b_tile = _pick_b_tile(n, l_in, l_out, cin_p, cout_p, batch_tile, mxu_bytes)
    n_pad = _round_up(n, b_tile)

    # channels-last; zero-pad batch/channels and add the 2 halo rows here so the
    # kernel needs no xpad scratch and the skip taps read x_ref directly.
    x = jnp.transpose(x_ncl, (0, 2, 1))          # (N, L, Cin)
    x = jnp.pad(x, ((0, n_pad - n), (1, 1), (0, cin_p - c_in)))

    s1, b1 = _fold_bn(params['bn1'])
    s2, b2 = _fold_bn(params['bn2'])
    s3, b3 = _fold_bn(params['bn3'])

    bn1_pack = jnp.pad(jnp.stack([s1, b1]), ((0, 0), (0, cin_p - c_in)))
    w1 = _pack_weight(params['w1'], cin_p, cout_p, out_scale=s2).astype(mxu_dtype)
    w23 = jnp.concatenate([                      # conv2 and skip fused along K
        _pack_weight(params['w2'], cout_p, cout_p),
        _pack_weight(params['w3'], cin_p, cout_p, out_scale=s3),
    ], axis=0).astype(mxu_dtype)
    bias_pack = jnp.pad(
        jnp.stack([params['b1'] * s2 + b2,                       # conv1 (+BN2)
                   params['b2'] + params['b3'] * s3 + b3]),      # conv2 + skip (+BN3)
        ((0, 0), (0, cout_p - c_out)))

    m_total = n_pad * l_out
    cost = pl.CostEstimate(
        flops=2 * m_total * cout_p * (3 * cin_p)
              + 2 * m_total * cout_p * 3 * (cin_p + cout_p),
        transcendentals=0,
        bytes_accessed=(x.size + n_pad * l_out * cout_p) * 4
                       + (w1.size + w23.size) * mxu_bytes
                       + (bn1_pack.size + bias_pack.size) * 4)

    kernel = functools.partial(residual_conv_kernel, stride=stride)

    out = pl.pallas_call(
        kernel,
        out_shape=jax.ShapeDtypeStruct((n_pad, l_out, cout_p), x_ncl.dtype),
        grid=(n_pad // b_tile,),
        in_specs=[
            pl.BlockSpec((b_tile, l_in + 2, cin_p), lambda g: (g, 0, 0)),
            pl.BlockSpec(bn1_pack.shape, lambda g: (0, 0)),     # constants: block
            pl.BlockSpec(w1.shape, lambda g: (0, 0)),           # index never changes,
            pl.BlockSpec(w23.shape, lambda g: (0, 0)),          # so no re-copy across
            pl.BlockSpec(bias_pack.shape, lambda g: (0, 0)),    # grid steps.
        ],
        out_specs=pl.BlockSpec((b_tile, l_out, cout_p), lambda g: (g, 0, 0)),
        scratch_shapes=[
            pltpu.VMEM((b_tile, l_in + 2, cin_p), jnp.float32),  # padded ReLU(BN1(x))
        ],
        compiler_params=pltpu.CompilerParams(
            dimension_semantics=("parallel",),
            vmem_limit_bytes=64 * 1024 * 1024),
        cost_estimate=cost,
    )(x, bn1_pack, w1, w23, bias_pack)

    out = out[:n, :, :c_out]                     # drop batch / channel padding
    return jnp.transpose(out, (0, 2, 1))         # back to (N, Cout, L_out)


# ---------------------------- pure-JAX reference ----------------------------
def ref_forward(x, params, stride):
    eps = 1e-5

    def bn(y, p):
        g, b, m, v = p
        sc = (g / jnp.sqrt(v + eps))
        return (y - m[None, :, None]) * sc[None, :, None] + b[None, :, None]

    def conv(y, w, b, s):
        o = lax.conv_general_dilated(y, w, (s,), [(1, 1)],
                                     dimension_numbers=('NCH', 'OIH', 'NCH'),
                                     precision=lax.Precision.HIGHEST)
        return o + b[None, :, None]

    h = jnp.maximum(bn(x, params['bn1']), 0.0)
    y1 = conv(h, params['w1'], params['b1'], stride)
    h2 = jnp.maximum(bn(y1, params['bn2']), 0.0)
    y2 = conv(h2, params['w2'], params['b2'], 1)
    sk = bn(conv(x, params['w3'], params['b3'], stride), params['bn3'])
    return y2 + sk


if __name__ == "__main__":
    N, C_IN, C_OUT, L, STRIDE = 2, 4, 8, 16, 2

    key = jax.random.PRNGKey(0)
    ks = jax.random.split(key, 12)

    def bn_params(k, c):
        k1, k2, k3, k4 = jax.random.split(k, 4)
        gamma = 1.0 + 0.1 * jax.random.normal(k1, (c,), jnp.float32)
        beta = 0.1 * jax.random.normal(k2, (c,), jnp.float32)
        mean = 0.1 * jax.random.normal(k3, (c,), jnp.float32)
        var = 0.5 + 0.5 * jax.nn.softplus(jax.random.normal(k4, (c,), jnp.float32))
        return (gamma, beta, mean, var)

    x = jax.random.normal(ks[0], (N, C_IN, L), jnp.float32)
    params = {
        'bn1': bn_params(ks[1], C_IN),
        'w1': 0.2 * jax.random.normal(ks[2], (C_OUT, C_IN, 3), jnp.float32),
        'b1': 0.1 * jax.random.normal(ks[3], (C_OUT,), jnp.float32),
        'bn2': bn_params(ks[4], C_OUT),
        'w2': 0.2 * jax.random.normal(ks[5], (C_OUT, C_OUT, 3), jnp.float32),
        'b2': 0.1 * jax.random.normal(ks[6], (C_OUT,), jnp.float32),
        'w3': 0.2 * jax.random.normal(ks[7], (C_OUT, C_IN, 3), jnp.float32),
        'b3': 0.1 * jax.random.normal(ks[8], (C_OUT,), jnp.float32),
        'bn3': bn_params(ks[9], C_OUT),
    }

    out = residual_conv(x, params, STRIDE)       # bf16 MXU operands, f32 accumulation
    out = jax.block_until_ready(out)

    ref = ref_forward(x, params, STRIDE)
    assert out.shape == ref.shape, (out.shape, ref.shape)
    # Tolerance accounts for bf16 MXU operands (f32 accumulation) vs the f32
    # HIGHEST-precision reference.
    assert jnp.allclose(out, ref, atol=3e-2, rtol=3e-2), \
        float(jnp.max(jnp.abs(out - ref)))

    print("KERNEL_OK")
</pallas_src>

<mosaic_0001>
module attributes {stable_mosaic.version = 11 : i64} {
  func.func @residual_conv_kernel(%arg0: i32, %arg1: memref<1x18x128xf32, #tpu.memory_space<vmem>>, %arg2: memref<2x128xf32, #tpu.memory_space<vmem>>, %arg3: memref<384x128xbf16, #tpu.memory_space<vmem>>, %arg4: memref<768x128xbf16, #tpu.memory_space<vmem>>, %arg5: memref<2x128xf32, #tpu.memory_space<vmem>>, %arg6: memref<1x8x128xf32, #tpu.memory_space<vmem>>, %arg7: memref<1x18x128xf32, #tpu.memory_space<vmem>>) attributes {dimension_semantics = [#tpu.dimension_semantics<parallel>], iteration_bounds = array<i64: 2>, scalar_prefetch = 0 : i64, scratch_operands = 1 : i64, tpu.core_type = #tpu.core_type<tc>, window_params = [{transform_indices = @transform_0, window_bounds = array<i64: 1, 18, 128>}, {pipeline_mode = #tpu.pipeline_mode<synchronous>, transform_indices = @transform_1, window_bounds = array<i64: 2, 128>}, {pipeline_mode = #tpu.pipeline_mode<synchronous>, transform_indices = @transform_2, window_bounds = array<i64: 384, 128>}, {pipeline_mode = #tpu.pipeline_mode<synchronous>, transform_indices = @transform_3, window_bounds = array<i64: 768, 128>}, {pipeline_mode = #tpu.pipeline_mode<synchronous>, transform_indices = @transform_4, window_bounds = array<i64: 2, 128>}, {transform_indices = @transform_5, window_bounds = array<i64: 1, 8, 128>}]} {
    %c0 = arith.constant 0 : index
    %c0_0 = arith.constant 0 : index
    %c0_1 = arith.constant 0 : index
    %0 = vector.load %arg1[%c0, %c0_0, %c0_1] : memref<1x18x128xf32, #tpu.memory_space<vmem>>, vector<1x18x128xf32>
    %c0_2 = arith.constant 0 : index
    %c0_3 = arith.constant 0 : index
    %1 = vector.load %arg2[%c0_2, %c0_3] : memref<2x128xf32, #tpu.memory_space<vmem>>, vector<2x128xf32>
    %2 = vector.extract_strided_slice %1 {offsets = [0, 0], sizes = [1, 128], strides = [1, 1]} : vector<2x128xf32> to vector<1x128xf32>
    %3 = vector.shape_cast %2 : vector<1x128xf32> to vector<1x1x128xf32>
    %4 = vector.broadcast %3 : vector<1x1x128xf32> to vector<1x18x128xf32>
    %5 = arith.mulf %0, %4 : vector<1x18x128xf32>
    %6 = vector.extract_strided_slice %1 {offsets = [1, 0], sizes = [1, 128], strides = [1, 1]} : vector<2x128xf32> to vector<1x128xf32>
    %7 = vector.shape_cast %6 : vector<1x128xf32> to vector<1x1x128xf32>
    %8 = vector.broadcast %7 : vector<1x1x128xf32> to vector<1x18x128xf32>
    %9 = arith.addf %5, %8 : vector<1x18x128xf32>
    %cst = arith.constant 0.000000e+00 : f32
    %10 = vector.broadcast %cst : f32 to vector<1x18x128xf32>
    %11 = arith.maximumf %9, %10 : vector<1x18x128xf32>
    %12 = tpu.iota {dimensions = array<i32: 0>} : vector<18x128xi32>
    %c1_i32 = arith.constant 1 : i32
    %13 = vector.broadcast %c1_i32 : i32 to vector<18x128xi32>
    %14 = arith.cmpi sge, %12, %13 : vector<18x128xi32>
    %c16_i32 = arith.constant 16 : i32
    %15 = vector.broadcast %c16_i32 : i32 to vector<18x128xi32>
    %16 = arith.cmpi sle, %12, %15 : vector<18x128xi32>
    %17 = arith.andi %14, %16 : vector<18x128xi1>
    %18 = vector.shape_cast %17 : vector<18x128xi1> to vector<1x18x128xi1>
    %cst_4 = arith.constant 0.000000e+00 : f32
    %19 = vector.broadcast %cst_4 : f32 to vector<1x18x128xf32>
    %20 = arith.select %18, %11, %19 : vector<1x18x128xi1>, vector<1x18x128xf32>
    %c0_5 = arith.constant 0 : index
    %c0_6 = arith.constant 0 : index
    %c0_7 = arith.constant 0 : index
    %21 = vector.load %arg7[%c0_5, %c0_6, %c0_7] : memref<1x18x128xf32, #tpu.memory_space<vmem>>, vector<1x18x128xf32>
    tpu.vector_store %arg7[%c0_5, %c0_6, %c0_7], %20 {strides = array<i32>} : memref<1x18x128xf32, #tpu.memory_space<vmem>>, vector<1x18x128xf32>,
    %c0_8 = arith.constant 0 : index
    %c0_9 = arith.constant 0 : index
    %22 = vector.load %arg5[%c0_8, %c0_9] : memref<2x128xf32, #tpu.memory_space<vmem>>, vector<2x128xf32>
    %c0_10 = arith.constant 0 : index
    %c0_11 = arith.constant 0 : index
    %c0_12 = arith.constant 0 : index
    %23 = tpu.strided_load %arg7[%c0_10, %c0_11, %c0_12] {strides = array<i32: 1, 2, 1>} : memref<1x18x128xf32, #tpu.memory_space<vmem>>, vector<1x8x128xf32>
    %c0_13 = arith.constant 0 : index
    %c1 = arith.constant 1 : index
    %c0_14 = arith.constant 0 : index
    %24 = tpu.strided_load %arg7[%c0_13, %c1, %c0_14] {strides = array<i32: 1, 2, 1>} : memref<1x18x128xf32, #tpu.memory_space<vmem>>, vector<1x8x128xf32>
    %c0_15 = arith.constant 0 : index
    %c2 = arith.constant 2 : index
    %c0_16 = arith.constant 0 : index
    %25 = tpu.strided_load %arg7[%c0_15, %c2, %c0_16] {strides = array<i32: 1, 2, 1>} : memref<1x18x128xf32, #tpu.memory_space<vmem>>, vector<1x8x128xf32>
    %26 = tpu.concatenate %23, %24, %25 in 2 : vector<1x8x128xf32>, vector<1x8x128xf32>, vector<1x8x128xf32> -> vector<1x8x384xf32>
    %27 = vector.shape_cast %26 : vector<1x8x384xf32> to vector<8x384xf32>
    %28 = arith.truncf %27 : vector<8x384xf32> to vector<8x384xbf16>
    %c0_17 = arith.constant 0 : index
    %c0_18 = arith.constant 0 : index
    %29 = vector.load %arg3[%c0_17, %c0_18] : memref<384x128xbf16, #tpu.memory_space<vmem>>, vector<384x128xbf16>
    %cst_19 = arith.constant dense<0.000000e+00> : vector<8x128xf32>
    %30 = tpu.matmul %28, %29, %cst_19 {dimension_numbers = #tpu.dot_dimension_numbers<[1], [0], [0], [1], [0, 0, 1, 1], [], []>} : vector<8x384xbf16>, vector<384x128xbf16>, vector<8x128xf32> -> vector<8x128xf32>
    %31 = vector.extract_strided_slice %22 {offsets = [0, 0], sizes = [1, 128], strides = [1, 1]} : vector<2x128xf32> to vector<1x128xf32>
    %32 = vector.broadcast %31 : vector<1x128xf32> to vector<8x128xf32>
    %33 = arith.addf %30, %32 : vector<8x128xf32>
    %cst_20 = arith.constant 0.000000e+00 : f32
    %34 = vector.broadcast %cst_20 : f32 to vector<8x128xf32>
    %35 = arith.maximumf %33, %34 : vector<8x128xf32>
    %cst_21 = arith.constant 0.000000e+00 : f32
    %36 = vector.broadcast %cst_21 : f32 to vector<1x1x128xf32>
    %37 = vector.shape_cast %35 : vector<8x128xf32> to vector<1x8x128xf32>
    %38 = tpu.concatenate %36, %37, %36 in 1 : vector<1x1x128xf32>, vector<1x8x128xf32>, vector<1x1x128xf32> -> vector<1x10x128xf32>
    %39 = vector.extract_strided_slice %38 {offsets = [0, 0, 0], sizes = [1, 8, 128], strides = [1, 1, 1]} : vector<1x10x128xf32> to vector<1x8x128xf32>
    %40 = vector.extract_strided_slice %38 {offsets = [0, 1, 0], sizes = [1, 8, 128], strides = [1, 1, 1]} : vector<1x10x128xf32> to vector<1x8x128xf32>
    %41 = vector.extract_strided_slice %38 {offsets = [0, 2, 0], sizes = [1, 8, 128], strides = [1, 1, 1]} : vector<1x10x128xf32> to vector<1x8x128xf32>
    %42 = tpu.concatenate %39, %40, %41 in 2 : vector<1x8x128xf32>, vector<1x8x128xf32>, vector<1x8x128xf32> -> vector<1x8x384xf32>
    %c0_22 = arith.constant 0 : index
    %c0_23 = arith.constant 0 : index
    %c0_24 = arith.constant 0 : index
    %43 = tpu.strided_load %arg1[%c0_22, %c0_23, %c0_24] {strides = array<i32: 1, 2, 1>} : memref<1x18x128xf32, #tpu.memory_space<vmem>>, vector<1x8x128xf32>
    %c0_25 = arith.constant 0 : index
    %c1_26 = arith.constant 1 : index
    %c0_27 = arith.constant 0 : index
    %44 = tpu.strided_load %arg1[%c0_25, %c1_26, %c0_27] {strides = array<i32: 1, 2, 1>} : memref<1x18x128xf32, #tpu.memory_space<vmem>>, vector<1x8x128xf32>
    %c0_28 = arith.constant 0 : index
    %c2_29 = arith.constant 2 : index
    %c0_30 = arith.constant 0 : index
    %45 = tpu.strided_load %arg1[%c0_28, %c2_29, %c0_30] {strides = array<i32: 1, 2, 1>} : memref<1x18x128xf32, #tpu.memory_space<vmem>>, vector<1x8x128xf32>
    %46 = tpu.concatenate %43, %44, %45 in 2 : vector<1x8x128xf32>, vector<1x8x128xf32>, vector<1x8x128xf32> -> vector<1x8x384xf32>
    %47 = tpu.concatenate %42, %46 in 2 : vector<1x8x384xf32>, vector<1x8x384xf32> -> vector<1x8x768xf32>
    %48 = vector.shape_cast %47 : vector<1x8x768xf32> to vector<8x768xf32>
    %49 = arith.truncf %48 : vector<8x768xf32> to vector<8x768xbf16>
    %c0_31 = arith.constant 0 : index
    %c0_32 = arith.constant 0 : index
    %50 = vector.load %arg4[%c0_31, %c0_32] : memref<768x128xbf16, #tpu.memory_space<vmem>>, vector<768x128xbf16>
    %cst_33 = arith.constant dense<0.000000e+00> : vector<8x128xf32>
    %51 = tpu.matmul %49, %50, %cst_33 {dimension_numbers = #tpu.dot_dimension_numbers<[1], [0], [0], [1], [0, 0, 1, 1], [], []>} : vector<8x768xbf16>, vector<768x128xbf16>, vector<8x128xf32> -> vector<8x128xf32>
    %52 = vector.extract_strided_slice %22 {offsets = [1, 0], sizes = [1, 128], strides = [1, 1]} : vector<2x128xf32> to vector<1x128xf32>
    %53 = vector.broadcast %52 : vector<1x128xf32> to vector<8x128xf32>
    %54 = arith.addf %51, %53 : vector<8x128xf32>
    %55 = vector.shape_cast %54 : vector<8x128xf32> to vector<1x8x128xf32>
    %c0_34 = arith.constant 0 : index
    %c0_35 = arith.constant 0 : index
    %c0_36 = arith.constant 0 : index
    %56 = vector.load %arg6[%c0_34, %c0_35, %c0_36] : memref<1x8x128xf32, #tpu.memory_space<vmem>>, vector<1x8x128xf32>
    tpu.vector_store %arg6[%c0_34, %c0_35, %c0_36], %55 {strides = array<i32>} : memref<1x8x128xf32, #tpu.memory_space<vmem>>, vector<1x8x128xf32>,
    return
  }
  func.func @transform_0(%arg0: i32) -> (i32, i32, i32) {
    %c0_i32 = arith.constant 0 : i32
    %c0_i32_0 = arith.constant 0 : i32
    %c0_i32_1 = arith.constant 0 : i32
    return %arg0, %c0_i32, %c0_i32_0 : i32, i32, i32
  }
  func.func @transform_1(%arg0: i32) -> (i32, i32) {
    %c0_i32 = arith.constant 0 : i32
    %c0_i32_0 = arith.constant 0 : i32
    %c0_i32_1 = arith.constant 0 : i32
    return %c0_i32, %c0_i32_0 : i32, i32
  }
  func.func @transform_2(%arg0: i32) -> (i32, i32) {
    %c0_i32 = arith.constant 0 : i32
    %c0_i32_0 = arith.constant 0 : i32
    %c0_i32_1 = arith.constant 0 : i32
    return %c0_i32, %c0_i32_0 : i32, i32
  }
  func.func @transform_3(%arg0: i32) -> (i32, i32) {
    %c0_i32 = arith.constant 0 : i32
    %c0_i32_0 = arith.constant 0 : i32
    %c0_i32_1 = arith.constant 0 : i32
    return %c0_i32, %c0_i32_0 : i32, i32
  }
  func.func @transform_4(%arg0: i32) -> (i32, i32) {
    %c0_i32 = arith.constant 0 : i32
    %c0_i32_0 = arith.constant 0 : i32
    %c0_i32_1 = arith.constant 0 : i32
    return %c0_i32, %c0_i32_0 : i32, i32
  }
  func.func @transform_5(%arg0: i32) -> (i32, i32, i32) {
    %c0_i32 = arith.constant 0 : i32
    %c0_i32_0 = arith.constant 0 : i32
    %c0_i32_1 = arith.constant 0 : i32
    return %arg0, %c0_i32, %c0_i32_0 : i32, i32, i32
  }
}

</mosaic_0001>

<bundles_post_ra>
// kernel: tpu_custom_call.1
= control target key start
LH: loop header
LB: loop body
LE: loop exit
PB: predicated region body
PF: predicated region fallthrough
CT: control target
= control target key end

     0   :  { %10 = vsyncpa [#allocation4], 0  ;;  %s1857_s0 = inlined_call_operand.vmem [shape: f32[2,18,128], index: 0, kind: input, shape index: {}]   ;;  %s1858_s1 = inlined_call_operand.vmem [shape: f32[2,128], index: 1, kind: input, shape index: {}]   ;;  %s1859_s2 = inlined_call_operand.hbm [shape: bf16[384,128], index: 2, kind: input, shape index: {}]   ;;  %s1860_s3 = inlined_call_operand.hbm [shape: bf16[768,128], index: 3, kind: input, shape index: {}]   ;;  %s1861_s4 = inlined_call_operand.vmem [shape: f32[2,128], index: 4, kind: input, shape index: {}]   ;;  %s1862_s5 = inlined_call_operand.hbm [shape: f32[2,8,128], index: 5, kind: output, shape index: {}]  }
   0x1   :  { %11 = vsyncpa [#allocation7], 0 }
   0x2   :  { %12 = vsyncpa [#allocation5], 0 }
   0x3   :  { %14 = vsyncpa [#allocation5 + $0x1], 0  ;;  %s1733_s18 = smov 0   ;;  %s1735_s19 = smov 0  }
   0x4   :  { %s1737_s20 = smov 0   ;;  %s1739_s21 = smov 0  }
   0x5 LB: > { %s1754_s22 = sadd.s32 4294967295, %s1697_s21   ;;  %s1123_s23 = sadd.s32 4294967294, %s1697_s21   ;;  %s1697_s21 = sphi %s1739_s21, %s1869_s21   ;;  %s1693_s20 = sphi %s1737_s20, %s1868_s20   ;;  %s1689_s19 = sphi %s1735_s19, %s1867_s19   ;;  %s1685_s18 = sphi %s1733_s18, %s1866_s18  }
   0x6   : > { %s1758_s24 = sadd.s32 1, %s1697_s21   ;;  %s137_s25 = sadd.s32 1, %s1693_s20 }
   0x7   : > { %s134_s26 = ssub.s32 %s1697_s21, %s1758_s24  ;;  %p147_p0 = scmp.ne.s32.totalorder %s1693_s20, %s1689_s19 }
   0x8   : > { %p135_p1 = scmp.eq.s32.totalorder %s134_s26, 0  ;;  %p148_p2 = scmp.eq.s32.totalorder %s1754_s22, 1 }
   0x9   : > { %p153_p3 = scmp.ne.s32.totalorder %s1689_s19, %s1685_s18  ;;  %p154_p4 = scmp.eq.s32.totalorder %s1123_s23, 1 }
   0xa   : > { %s1769_s27 = scalar_select %p135_p1, %s1693_s20, %s137_s25  }
   0xb   : > { %p1771_p5 = por %p148_p2, %p147_p0  ;;  %p1775_p6 = por %p154_p4, %p153_p3 }
   0xc   : > { %p1124_p7 = scmp.ge.s32.totalorder %s1697_s21, 1  ;;  %p161_p8 = scmp.lt.s32.totalorder %s1697_s21, 3 }
   0xd   : > { %p1526_p9 = scmp.eq.s32.totalorder %s1754_s22, 0  ;;  %s175_s8 = sshll.u32 %s1859_s2, 4  ;;  %s176_s8 = int_to_ptr.hbm [resolvable:$true] %s175_s8 }
   0xe   : > { %p1782_p10 = pnand %p1124_p7, %p161_p8  ;;  %s1699_s9 = smov [#allocation3]  }
   0xf   : > { %s177_s10 = sshll.u32 %s1699_s9, 4  ;;  %s189_s13 = sshll.u32 %s1860_s3, 4  ;;  %s178_s10 = int_to_ptr.vmem [resolvable:$true] %s177_s10  ;;  %s190_s13 = int_to_ptr.hbm [resolvable:$true] %s189_s13 }
  0x10   : > { %p1515_p11 = pneg %p1782_p10  ;;  %s1700_s14 = smov 64  }
  0x11   : > { %s1701_s15 = smov 4   ;;  %s1702_s16 = smov [#allocation6]  }
  0x12   : > { %p1516_p12 = pnand %p1526_p9, %p1515_p11  ;;  %s191_s17 = sshll.u32 %s1702_s16, 4  ;;  %s192_s17 = int_to_ptr.vmem [resolvable:$true] %s191_s17 }
  0x13   : > { %218 = sbr.rel (%p1782_p10) target bundleno = 357 (0x165), region = 40 }
  0x14   : > { %1518 = dma.hbm_to_vmem [thread:$0]  (!%p1516_p12), %s176_s8, 3072, %s178_s10, [#allocation4], %s1700_s14, %s1700_s14, %s1701_s15  }
  0x15   : > { %1521 = dma.hbm_to_vmem [thread:$0]  (!%p1516_p12), %s190_s13, 6144, %s192_s17, [#allocation7], %s1700_s14, %s1700_s14, %s1701_s15  }
  0x18   : > { %1672 = dma.done.wait (%p1526_p9), [#allocation4], 3072  }
  0x19   : > { %1674 = vsyncadd (%p1526_p9), [#allocation4], 4294964224 }
  0x1a   : > { %1676 = dma.done.wait (%p1526_p9), [#allocation7], 6144  }
  0x1b   : > { %1678 = vsyncadd (%p1526_p9), [#allocation7], 4294961152  ;;  %p252_p13 = scmp.lt.s32.totalorder %s1754_s22, 1  ;;  %v1439_v0 = vld [vmem:[#allocation3 + $0x38] sm:$0xff]  ;;  %v1438_v3 = vld [vmem:[#allocation3 + $0x30] sm:$0xff]  ;;  %v272_v5 = vlaneseq  ;;  %vm536_vm2 = vcmask 1040384  }
  0x1c   : > { %v1447_v1 = vld [vmem:[#allocation3 + $0x78] sm:$0xff]  ;;  %493 = vmatpush.bf16.msra.mxu0 %v1439_v0  ;;  %v1446_v4 = vld [vmem:[#allocation3 + $0x70] sm:$0xff]  ;;  %v1437_v7 = vld [vmem:[#allocation3 + $0x28] sm:$0xff]  ;;  %vm541_vm5 = vcmask 1046528   ;;  %vm546_vm6 = vcmask 1045504   ;;  %s249_s11 = sand.u32 1, %s1689_s19  }
  0x1d   : > { %s253_s23 = scalar_select %p252_p13, %s1754_s22, 1  ;;  %v1455_v2 = vld [vmem:[#allocation3 + $0xb8] sm:$0xff]  ;;  %506 = vmatpush.bf16.msra.mxu1 %v1447_v1  ;;  %v1454_v6 = vld [vmem:[#allocation3 + $0xb0] sm:$0xff]  ;;  %v1445_v8 = vld [vmem:[#allocation3 + $0x68] sm:$0xff]  ;;  %v273_v9 = vshrl.u32 %v272_v5, 7 }
  0x1e   : > { %519 = vmatpush.bf16.msra.mxu2 %v1455_v2  ;;  %v1453_v10 = vld [vmem:[#allocation3 + $0xa8] sm:$0xff]  ;;  %v1463_v17 = vld [vmem:[#allocation6 + $0x38] sm:$0xff]  ;;  %v1436_v18 = vld [vmem:[#allocation3 + $0x20] sm:$0xff]  ;;  %s1131_s12 = sshll.u32 %s249_s11, 3  ;;  %s1429_s13 = sshll.u32 %s1754_s22, 3 }
  0x1f   : > { %s1504_s25 = smul.u32 24, %s253_s23  ;;  %v260_v13 = vld [vmem:[%s1858_s1] sm:$0x3]  ;;  %v1444_v19 = vld [vmem:[#allocation3 + $0x60] sm:$0xff]  ;;  %v275_v20 = vadd.s32 16, %v273_v9  ;;  %947 = vmatpush.bf16.msra.mxu3 %v1463_v17  ;;  %v1462_v25 = vld [vmem:[#allocation6 + $0x30] sm:$0xff]  ;;  %s1037_s16 = scalar_lea.hbm %s1862_s5, %s1429_s13 }
  0x20   : > { %494 = vmatpush.bf16.msra.mxu0 %v1438_v3  ;;  %v261_v14 = vperm.slane %v260_v13, 0  ;;  %v265_v15 = vperm.slane %v260_v13, 1  ;;  %v1452_v21 = vld [vmem:[#allocation3 + $0xa0] sm:$0xff]  ;;  %v1435_v29 = vld [vmem:[#allocation3 + $0x18] sm:$0xff]  ;;  %vm276_vm0 = vcmp.ge.s32.totalorder %v273_v9, 1  ;;  %v1461_v35 = vld [vmem:[#allocation6 + $0x28] sm:$0xff] }
  0x21   : > { %s1811_s6 = scalar_lea.vmem %s1857_s0, %s1504_s25  ;;  %507 = vmatpush.bf16.msra.mxu1 %v1446_v4  ;;  %v1443_v30 = vld [vmem:[#allocation3 + $0x58] sm:$0xff]  ;;  %vm281_vm1 = vcmp.le.s32.totalorder %v275_v20, 16  ;;  %v1434_v38 = vld [vmem:[#allocation3 + $0x10] sm:$0xff]  ;;  %v1460_v41 = vld [vmem:[#allocation6 + $0x20] sm:$0xff]  ;;  %s251_s17 = scalar_lea.vmem [#allocation8], %s1131_s12 }
  0x22   : > { %520 = vmatpush.bf16.msra.mxu2 %v1454_v6  ;;  %v257_v11 = vld [vmem:[%s1811_s6] sm:$0xff]  ;;  %v258_v12 = vld [vmem:[%s1811_s6 + $0x8] sm:$0xff]  ;;  %v259_v16 = vld [vmem:[%s1811_s6 + $0x10] sm:$0x3]  ;;  %s1039_s23 = sshll.u32 %s251_s17, 4  ;;  %s1041_s25 = sshll.u32 %s1037_s16, 4  ;;  %s1040_s23 = int_to_ptr.vmem [resolvable:$true] %s1039_s23  ;;  %s1042_s25 = int_to_ptr.hbm [resolvable:$true] %s1041_s25 }
  0x23   : > { %v262_v22 = vmul.f32 %v261_v14, %v257_v11  ;;  %v263_v23 = vmul.f32 %v261_v14, %v258_v12  ;;  %v264_v24 = vmul.f32 %v261_v14, %v259_v16  ;;  %v1451_v31 = vld [vmem:[#allocation3 + $0x98] sm:$0xff]  ;;  %948 = vmatpush.bf16.msra.mxu3 %v1462_v25  ;;  %v1442_v39 = vld [vmem:[#allocation3 + $0x50] sm:$0xff]  ;;  %v1433_v42 = vld [vmem:[#allocation3 + $0x8] sm:$0xff]  ;;  %s1027_s26 = scalar_lea.sflag [#allocation5], %s249_s11  ;;  %s1641_s22 = sshra.s32 %s1042_s25, 4  ;;  %s1642_s22 = int_to_ptr.hbm [resolvable:$true] %s1641_s22 }
  0x24   : > { %495 = vmatpush.bf16.msra.mxu0 %v1437_v7  ;;  %v1450_v40 = vld [vmem:[#allocation3 + $0x90] sm:$0xff]  ;;  %v1441_v43 = vld [vmem:[#allocation3 + $0x48] sm:$0xff]  ;;  %v1459_v45 = vld [vmem:[#allocation6 + $0x18] sm:$0xff]  ;;  %s1643_s30 = scalar_lea.hbm %s1642_s22, 8  ;;  %s1647_s8 = scalar_lea.hbm %s1862_s5, 16 }
  0x25   : > { %508 = vmatpush.bf16.msra.mxu1 %v1445_v8  ;;  %v266_v26 = vadd.f32 %v265_v15, %v262_v22  ;;  %v267_v27 = vadd.f32 %v265_v15, %v263_v23  ;;  %v268_v28 = vadd.f32 %v265_v15, %v264_v24  ;;  %v1449_v44 = vld [vmem:[#allocation3 + $0x88] sm:$0xff]  ;;  %v1432_v46 = vld [vmem:[#allocation3] sm:$0xff]  ;;  %v1471_v52 = vld [vmem:[#allocation6 + $0x78] sm:$0xff]  ;;  %p1644_p0 = scmp.ne.s32.totalorder %s1642_s22, %s1643_s30  ;;  %p1648_p3 = scmp.lt.s32.totalorder %s1642_s22, %s1862_s5 }
  0x26   : > { %521 = vmatpush.bf16.msra.mxu2 %v1453_v10  ;;  %v1440_v47 = vld [vmem:[#allocation3 + $0x40] sm:$0xff]  ;;  %v1479_v53 = vld [vmem:[#allocation6 + $0xb8] sm:$0xff]  ;;  %v1458_v58 = vld [vmem:[#allocation6 + $0x10] sm:$0xff]  ;;  %p1649_p4 = scmp.lt.s32.totalorder %s1647_s8, %s1643_s30 }
  0x27   : > { %v269_v32 = vmax.f32 %v266_v26, 0.0  ;;  %v270_v33 = vmax.f32 %v267_v27, 0.0  ;;  %v271_v34 = vmax.f32 %v268_v28, 0.0  ;;  %949 = vmatpush.bf16.msra.mxu3 %v1461_v35  ;;  %v1448_v50 = vld [vmem:[#allocation3 + $0x80] sm:$0xff]  ;;  %v1487_v54 = vld [vmem:[#allocation6 + $0xf8] sm:$0xff]  ;;  %v1470_v59 = vld [vmem:[#allocation6 + $0x70] sm:$0xff]  ;;  %p1645_p1 = pnand %p1644_p0, %p1771_p5 }
  0x28   : > { %496 = vmatpush.bf16.msra.mxu0 %v1436_v18  ;;  %v1478_v60 = vld [vmem:[#allocation6 + $0xb0] sm:$0xff]  ;;  %v1457_v62 = vld [vmem:[#allocation6 + $0x8] sm:$0xff]  ;;  %v1456_v2 = vld [vmem:[#allocation6] sm:$0xff]  ;;  %p1650_p7 = por %p1649_p4, %p1648_p3 }
  0x29   : > { %509 = vmatpush.bf16.msra.mxu1 %v1444_v19  ;;  %v285_v36 = vsel %vm276_vm0, %v269_v32, 0.0  ;;  %289 = vst [vmem:[#allocation2 + $0x8] sm:$0xff] %v270_v33  ;;  %v287_v37 = vsel %vm281_vm1, %v271_v34, 0.0  ;;  %v1486_v61 = vld [vmem:[#allocation6 + $0xf0] sm:$0xff]  ;;  %v1469_v63 = vld [vmem:[#allocation6 + $0x68] sm:$0xff]  ;;  %v1468_v3 = vld [vmem:[#allocation6 + $0x60] sm:$0xff]  ;;  %p1646_p2 = pneg %p1645_p1 }
  0x2a   : > { %522 = vmatpush.bf16.msra.mxu2 %v1452_v21  ;;  %288 = vst [vmem:[#allocation2] sm:$0xff] %v285_v36  ;;  %v1477_v0 = vld [vmem:[#allocation6 + $0xa8] sm:$0xff]  ;;  %v1467_v4 = vld [vmem:[#allocation6 + $0x58] sm:$0xff]  ;;  %v1466_v5 = vld [vmem:[#allocation6 + $0x50] sm:$0xff] }
  0x2b   : > { %290 = vst [vmem:[#allocation2 + $0x10] sm:$0x3] %v287_v37  ;;  %950 = vmatpush.bf16.msra.mxu3 %v1460_v41  ;;  %v1485_v1 = vld [vmem:[#allocation6 + $0xe8] sm:$0xff]  ;;  %v1476_v7 = vld [vmem:[#allocation6 + $0xa0] sm:$0xff]  ;;  %v1495_v8 = vld [vmem:[#allocation6 + $0x138] sm:$0xff]  ;;  %p1651_p8 = pnand %p1650_p7, %p1646_p2 }
  0x2c   : > { %497 = vmatpush.bf16.msra.mxu0 %v1435_v29  ;;  %v1465_v6 = vld [vmem:[#allocation6 + $0x48] sm:$0xff]  ;;  %v1484_v9 = vld [vmem:[#allocation6 + $0xe0] sm:$0xff]  ;;  %v1475_v11 = vld [vmem:[#allocation6 + $0x98] sm:$0xff] }
  0x2d   : > { %510 = vmatpush.bf16.msra.mxu1 %v1443_v30  ;;  %v1464_v10 = vld [vmem:[#allocation6 + $0x40] sm:$0xff]  ;;  %v1494_v12 = vld [vmem:[#allocation6 + $0x130] sm:$0xff]  ;;  %v1503_v13 = vld [vmem:[#allocation6 + $0x178] sm:$0xff] }
  0x2e   : > { %523 = vmatpush.bf16.msra.mxu2 %v1451_v31  ;;  %v1483_v14 = vld [vmem:[#allocation6 + $0xd8] sm:$0xff]  ;;  %v1474_v15 = vld [vmem:[#allocation6 + $0x90] sm:$0xff]  ;;  %v1493_v16 = vld [vmem:[#allocation6 + $0x128] sm:$0xff] }
  0x2f   : > { %951 = vmatpush.bf16.msra.mxu3 %v1459_v45  ;;  %v1502_v17 = vld [vmem:[#allocation6 + $0x170] sm:$0xff]  ;;  %v1473_v19 = vld [vmem:[#allocation6 + $0x88] sm:$0xff]  ;;  %v1492_v20 = vld [vmem:[#allocation6 + $0x120] sm:$0xff] }
  0x30   : > { %498 = vmatpush.bf16.msra.mxu0 %v1434_v38  ;;  %v1482_v18 = vld [vmem:[#allocation6 + $0xd0] sm:$0xff]  ;;  %v1501_v21 = vld [vmem:[#allocation6 + $0x168] sm:$0xff]  ;;  %v1472_v23 = vld [vmem:[#allocation6 + $0x80] sm:$0xff] }
  0x31   : > { %511 = vmatpush.bf16.msra.mxu1 %v1442_v39  ;;  %v292_v48 = vld [vmem:[#allocation2] ss:$2 sm:$0xff]  ;;  %v294_v49 = vld [vmem:[#allocation2 + $0x1] ss:$2 sm:$0xff]  ;;  %v1491_v24 = vld [vmem:[#allocation6 + $0x118] sm:$0xff] }
  0x32   : > { %524 = vmatpush.bf16.msra.mxu2 %v1450_v40  ;;  %v296_v51 = vld [vmem:[#allocation2 + $0x2] ss:$2 sm:$0xff]  ;;  %v297_v55 = vpack.c.bf16 %v292_v48, %v292_v48  ;;  %v298_v56 = vpack.c.bf16 %v294_v49, %v294_v49  ;;  %v1500_v25 = vld [vmem:[#allocation6 + $0x160] sm:$0xff]  ;;  %v291_v34 = vld [vmem:[%s1861_s4] sm:$0x3] }
  0x33   : > { %v299_v57 = vpack.c.bf16 %v296_v51, %v296_v51  ;;  %952 = vmatpush.bf16.msra.mxu3 %v1458_v58  ;;  %v1481_v22 = vld [vmem:[#allocation6 + $0xc8] sm:$0xff]  ;;  %v1480_v26 = vld [vmem:[#allocation6 + $0xc0] sm:$0xff]  ;;  %v1490_v27 = vld [vmem:[#allocation6 + $0x110] sm:$0xff]  ;;  %v348_v36 = vperm.slane %v291_v34, 0 }
  0x34   : > { %499 = vmatpush.bf16.msra.mxu0 %v1433_v42  ;;  %v1499_v28 = vld [vmem:[#allocation6 + $0x158] sm:$0xff]  ;;  %v551_v29 = vld [vmem:[%s1811_s6] ss:$2 sm:$0xff]  ;;  %v1488_v33 = vld [vmem:[#allocation6 + $0x100] sm:$0xff] }
  0x35   : > { %512 = vmatpush.bf16.msra.mxu1 %v1441_v43  ;;  %v559_v30 = vpack.c.bf16 %v551_v29, %v551_v29  ;;  %v1489_v31 = vld [vmem:[#allocation6 + $0x108] sm:$0xff]  ;;  %v1498_v32 = vld [vmem:[#allocation6 + $0x150] sm:$0xff]  ;;  %v1496_v37 = vld [vmem:[#allocation6 + $0x140] sm:$0xff] }
  0x36   : > { %525 = vmatpush.bf16.msra.mxu2 %v1449_v44  ;;  %v1497_v35 = vld [vmem:[#allocation6 + $0x148] sm:$0xff]  ;;  %vm1423_vm3 = vmneg %vm536_vm2 }
  0x37   : > { %953 = vmatpush.bf16.msra.mxu3 %v1457_v62  ;;  %vm1425_vm4 = vmpackc.low %vm1423_vm3, %vm1423_vm3  ;;  %v1230_v62 = vld [vmem:[%s1811_s6 + $0x2] ss:$2 sm:$0xff] }
  0x38   : > { %500 = vmatpush.bf16.msra.mxu0 %v1432_v46 }
  0x39   : > { %513 = vmatpush.bf16.msra.mxu1 %v1440_v47 }
  0x3a   : > { %526 = vmatpush.bf16.msra.mxu2 %v1448_v50 }
  0x3b   : > { %501 = vmatmul.bf16.vlgmr.msra.gmra.mxu0 %v297_v55  ;;  %954 = vmatpush.bf16.msra.mxu3 %v1456_v2 }
  0x3c   : > { %960 = vmatpush.bf16.msrb.mxu0 %v1471_v52  ;;  %514 = vmatmul.bf16.vlgmr.msra.gmra.mxu1 %v298_v56 }
  0x3d   : > { %973 = vmatpush.bf16.msrb.mxu1 %v1479_v53  ;;  %527 = vmatmul.bf16.vlgmr.msra.gmra.mxu2 %v299_v57 }
  0x3e   : > { %986 = vmatpush.bf16.msrb.mxu2 %v1487_v54 }
  0x3f   : > { %999 = vmatpush.bf16.msrb.mxu3 %v1495_v8 }
  0x40   : > { %961 = vmatpush.bf16.msrb.mxu0 %v1470_v59 }
  0x41   : > { %974 = vmatpush.bf16.msrb.mxu1 %v1478_v60  ;;  %v1229_v60 = vld [vmem:[%s1811_s6 + $0x1] ss:$2 sm:$0xff] }
  0x42   : > { %987 = vmatpush.bf16.msrb.mxu2 %v1486_v61  ;;  %v560_v61 = vpack.c.bf16 %v1229_v60, %v1229_v60 }
  0x43   : > { %1000 = vmatpush.bf16.msrb.mxu3 %v1494_v12 }
  0x44   : > { %962 = vmatpush.bf16.msrb.mxu0 %v1469_v63  ;;  %v561_v63 = vpack.c.bf16 %v1230_v62, %v1230_v62 }
  0x45   : > { %975 = vmatpush.bf16.msrb.mxu1 %v1477_v0 }
  0x46   : > { %988 = vmatpush.bf16.msrb.mxu2 %v1485_v1 }
  0x47   : > { %1001 = vmatpush.bf16.msrb.mxu3 %v1493_v16 }
  0x48   : > { %963 = vmatpush.bf16.msrb.mxu0 %v1468_v3 }
  0x49   : > { %976 = vmatpush.bf16.msrb.mxu1 %v1476_v7 }
  0x4a   : > { %989 = vmatpush.bf16.msrb.mxu2 %v1484_v9 }
  0x4b   : > { %1002 = vmatpush.bf16.msrb.mxu3 %v1492_v20 }
  0x4c   : > { %964 = vmatpush.bf16.msrb.mxu0 %v1467_v4  ;;  %v658_v4 = vperm.slane %v291_v34, 1 }
  0x4d   : > { %977 = vmatpush.bf16.msrb.mxu1 %v1475_v11 }
  0x4e   : > { %990 = vmatpush.bf16.msrb.mxu2 %v1483_v14 }
  0x4f   : > { %1003 = vmatpush.bf16.msrb.mxu3 %v1491_v24 }
  0x50   : > { %965 = vmatpush.bf16.msrb.mxu0 %v1466_v5 }
  0x51   : > { %978 = vmatpush.bf16.msrb.mxu1 %v1474_v15 }
  0x52   : > { %991 = vmatpush.bf16.msrb.mxu2 %v1482_v18 }
  0x53   : > { %1004 = vmatpush.bf16.msrb.mxu3 %v1490_v27 }
  0x54   : > { %966 = vmatpush.bf16.msrb.mxu0 %v1465_v6 }
  0x55   : > { %979 = vmatpush.bf16.msrb.mxu1 %v1473_v19 }
  0x56   : > { %992 = vmatpush.bf16.msrb.mxu2 %v1481_v22 }
  0x57   : > { %1005 = vmatpush.bf16.msrb.mxu3 %v1489_v31 }
  0x58   : > { %967 = vmatpush.bf16.msrb.mxu0 %v1464_v10 }
  0x59   : > { %980 = vmatpush.bf16.msrb.mxu1 %v1472_v23 }
  0x5a   : > { %993 = vmatpush.bf16.msrb.mxu2 %v1480_v26 }
  0x5b   : > { %1006 = vmatpush.bf16.msrb.mxu3 %v1488_v33 }
  0x5c   : > { %1012 = vmatpush.bf16.msra.mxu0 %v1503_v13 }
  0x5d   : > { %994 = vmatmul.bf16.vlgmr.msrb.gmra.mxu2 %v559_v30 }
  0x60   : > { %1013 = vmatpush.bf16.msra.mxu0 %v1502_v17 }
  0x64   : > { %1014 = vmatpush.bf16.msra.mxu0 %v1501_v21 }
  0x68   : > { %1015 = vmatpush.bf16.msra.mxu0 %v1500_v25 }
  0x6c   : > { %1016 = vmatpush.bf16.msra.mxu0 %v1499_v28 }
  0x70   : > { %1017 = vmatpush.bf16.msra.mxu0 %v1498_v32 }
  0x74   : > { %1018 = vmatpush.bf16.msra.mxu0 %v1497_v35 }
  0x78   : > { %1019 = vmatpush.bf16.msra.mxu0 %v1496_v37 }
  0xb8   : > { %v502_v38 = vpop.f32.mrf.mxu0 }
  0xb9   : > { %v515_v39 = vpop.f32.mrf.mxu1  ;;  %v503_v40 = vadd.f32 %v502_v38, %v348_v36 }
  0xbb   : > { %v516_v41 = vadd.f32 %v515_v39, %v503_v40 }
  0xc0   : > { %v528_v42 = vpop.f32.mrf.mxu2  ;;  %v504_v44 = vpop.f32.mrf.mxu0 }
  0xc1   : > { %v529_v43 = vadd.f32 %v528_v42, %v516_v41  ;;  %v517_v45 = vpop.f32.mrf.mxu1 }
  0xc3   : > { %v532_v46 = vmax.f32 %v529_v43, 0.0 }
  0xc5   : > { %v534_v47 = vrot.slane %v532_v46, 7 }
  0xc7   : > { %v537_v48 = vsel %vm536_vm2, 0.0, %v534_v47  ;;  %v538_v49 = vsel %vm536_vm2, %v534_v47, 0.0  ;;  %v1426_v50 = vpack.c.bf16 %v534_v47, %v534_v47 }
  0xc8   : > { %v530_v51 = vpop.f32.mrf.mxu2  ;;  %v542_v52 = vrot.slane %v537_v48, 1  ;;  %v543_v53 = vrot.slane %v538_v49, 1  ;;  %v547_v54 = vrot.slane %v537_v48, 2  ;;  %v548_v55 = vrot.slane %v538_v49, 2 }
  0xc9   : > { %1427 = vmatmul.msk.bf16.vlgmr.msra.gmra.mxu3 %vm1425_vm4, %v1426_v50 }
  0xca   : > { %v544_v56 = vsel %vm541_vm5, %v542_v52, %v543_v53  ;;  %v549_v57 = vsel %vm546_vm6, %v547_v54, %v548_v55 }
  0xcb   : > { %v557_v58 = vpack.c.bf16 %v544_v56, %v544_v56  ;;  %v558_v59 = vpack.c.bf16 %v549_v57, %v549_v57 }
  0xcd   : > { %968 = vmatmul.bf16.vlgmr.msrb.gmra.mxu0 %v557_v58  ;;  %981 = vmatmul.bf16.vlgmr.msrb.gmra.mxu1 %v558_v59 }
  0xd9   : > { %1007 = vmatmul.bf16.vlgmr.msrb.gmra.mxu3 %v560_v61 }
  0xdd   : > { %1020 = vmatmul.bf16.vlgmr.msra.gmra.mxu0 %v561_v63 }
  0xe0   : > { %v995_v0 = vpop.f32.mrf.mxu2 }
  0xe8   : > { %v997_v1 = vpop.f32.mrf.mxu2 }
 0x14a   : > { %v969_v2 = vpop.f32.mrf.mxu0  ;;  %v982_v3 = vpop.f32.mrf.mxu1 }
 0x14c   : > { %v956_v5 = vpop.f32.mrf.mxu3 }
 0x14d   : > { %v957_v6 = vadd.f32 %v956_v5, %v658_v4 }
 0x14f   : > { %v970_v9 = vadd.f32 %v969_v2, %v957_v6 }
 0x151   : > { %v983_v11 = vadd.f32 %v982_v3, %v970_v9 }
 0x152   : > { %v971_v7 = vpop.f32.mrf.mxu0  ;;  %v984_v8 = vpop.f32.mrf.mxu1 }
 0x153   : > { %v996_v13 = vadd.f32 %v995_v0, %v983_v11 }
 0x154   : > { %v958_v10 = vpop.f32.mrf.mxu3 }
 0x15a   : > { %v1021_v12 = vpop.f32.mrf.mxu0 }
 0x15c   : > { %v1008_v14 = vpop.f32.mrf.mxu3 }
 0x15d   : > { %v1009_v15 = vadd.f32 %v1008_v14, %v996_v13 }
 0x15f   : > { %v1022_v16 = vadd.f32 %v1021_v12, %v1009_v15 }
 0x161   : > { %1025 = vst [vmem:[%s251_s17] sm:$0xff] %v1022_v16 }
 0x162   : > { %v1023_v17 = vpop.f32.mrf.mxu0 }
 0x163   : > { %1654 = shalt.err (!%p1651_p8)
}
 0x164   : > { %1513 = dma.vmem_to_hbm [thread:$0]  (%p1771_p5), %s1040_s23, 128, %s1042_s25, %s1027_s26   ;;  %v1010_v18 = vpop.f32.mrf.mxu3 }
 0x165 PF: > { %p1530_p9 = scmp.ge.s32.totalorder %s1697_s21, 2  ;;  %s1053_s11 = sand.u32 1, %s1685_s18  }
 0x166   : > { %s1054_s12 = scalar_lea.sflag [#allocation5], %s1053_s11 }
 0x167   : > { %p1523_p10 = pnand %p1530_p9, %p1775_p6 }
 0x169   : > { %p1524_p11 = pneg %p1523_p10 }
 0x16b   : > { %1680 = dma.done.wait (%p1524_p11), %s1054_s12, 128  }
 0x16c   : > { %1682 = vsyncadd (%p1524_p11), %s1054_s12, 4294967168  ;;  %p17_p12 = scmp.ge.s32.totalorder %s1758_s24, 4   ;;  %s1866_s18 = smov %s1689_s19 }
 0x16d   : > { %s1867_s19 = smov %s1693_s20  ;;  %s1868_s20 = smov %s1769_s27 }
 0x16e   : > { %s1869_s21 = smov %s1758_s24  ;;  %19 = sbr.rel (!%p17_p12) target bundleno = 5 (0x5), region = 88 }
 0x173   :  { %1060 = vsyncpa [#allocation4], 1 }
 0x174   :  { %1062 = vsyncpa [#allocation4 + $0x1], 1 }
 0x175   :  { %1063 = vsyncpa [#allocation7], 1 }
 0x176   :  { %1064 = vsyncpa [#allocation5], 1 }
 0x177   :  { %1066 = vsyncpa [#allocation5 + $0x1], 1 }

</bundles_post_ra>
